<compile_context>
chip_gen: v6e
topology: v6e:2x2x1
jax: 0.10.0
libtpu: 0.0.40
codegen_flags: <defaults>
</compile_context>

<pallas_src>
import math

import jax
import jax.numpy as jnp
from jax import lax
from jax.experimental import pallas as pl
from jax.experimental.pallas import tpu as pltpu

_LANES = 128
_SUBLANES = 8
_CHUNK = _SUBLANES * _LANES          # 1024 elements: minimal (8, 128) slab
_MAX_TILE_ROWS = 8192                # 8192x128 f32 = 4 MiB per input block
_SMALL_INPUT_ELEMS = 1 << 20         # below this, pure-jnp is strictly faster


def _make_partial_sq_kernel(tile_rows, n_valid_rows, needs_mask):
    """Per grid step: fold the block's squared diffs into a (1, 128) slab."""

    def kernel(x_ref, y_ref, o_ref):
        d = x_ref[...].astype(jnp.float32) - y_ref[...].astype(jnp.float32)
        if needs_mask:
            # Last grid block may extend past the real rows; zero the garbage.
            # (tile_rows, 1) compare, broadcast in the where: cheap on vregs.
            i = pl.program_id(0)
            row_ids = lax.broadcasted_iota(jnp.int32, (tile_rows, 1), 0)
            valid = (row_ids + i * tile_rows) < n_valid_rows
            d = jnp.where(valid, d, jnp.float32(0.0))
        d2 = d * d
        # Sublane/VPU reduce to (1, 128): free under a DMA-bound kernel and
        # shrinks per-step writeback 8x.  Last dim stays 128 -> unmasked stores.
        o_ref[...] = jnp.sum(d2, axis=0, keepdims=True).reshape(1, 1, _LANES)

    return kernel


def _rmse_small(inputs, targets, n_true):
    d = inputs.astype(jnp.float32) - targets.astype(jnp.float32)
    return jnp.sqrt(jnp.sum(d * d) / jnp.float32(n_true))


def rmse_pallas(inputs, targets, *, min_pallas_elems=_SMALL_INPUT_ELEMS,
                max_tile_rows=_MAX_TILE_ROWS):
    assert inputs.shape == targets.shape, "inputs/targets must have same shape"
    n_true = int(math.prod(inputs.shape))

    # Small-input fallback: kernel launch + partials round-trip would dominate.
    if n_true < min_pallas_elems or n_true < _CHUNK:
        return _rmse_small(inputs, targets, n_true)

    x = jnp.ravel(inputs)    # native dtype; free reshape of contiguous data
    y = jnp.ravel(targets)

    # Bulk + tail split (no jnp.pad, no full-array HBM copies): the Pallas
    # kernel covers the largest prefix that is a multiple of 8*128; the
    # (<1024-element) tail is summed with plain jnp in the wrapper.
    bulk = (n_true // _CHUNK) * _CHUNK
    tail = n_true - bulk
    if tail != 0:
        x_bulk = lax.slice(x, (0,), (bulk,))
        y_bulk = lax.slice(y, (0,), (bulk,))
    else:
        x_bulk, y_bulk = x, y

    n_rows = bulk // _LANES              # multiple of 8 by construction
    tile_rows = min(max_tile_rows, n_rows)
    # Keep >= 2 grid blocks when possible so v7x megacore ("parallel") has
    # work for both TensorCores; harmless (sequential loop) on v5e/v6e.
    if tile_rows == n_rows and n_rows >= 2 * _SUBLANES:
        tile_rows = ((n_rows // 2 + _SUBLANES - 1) // _SUBLANES) * _SUBLANES
    num_blocks = pl.cdiv(n_rows, tile_rows)
    needs_mask = (n_rows % tile_rows) != 0

    x2d = x_bulk.reshape(n_rows, _LANES)
    y2d = y_bulk.reshape(n_rows, _LANES)

    partials = pl.pallas_call(
        _make_partial_sq_kernel(tile_rows, n_rows, needs_mask),
        out_shape=jax.ShapeDtypeStruct((num_blocks, 1, _LANES), jnp.float32),
        grid_spec=pltpu.PrefetchScalarGridSpec(
            num_scalar_prefetch=0,
            grid=(num_blocks,),
            in_specs=[
                pl.BlockSpec((tile_rows, _LANES), lambda i: (i, 0)),
                pl.BlockSpec((tile_rows, _LANES), lambda i: (i, 0)),
            ],
            out_specs=pl.BlockSpec((1, 1, _LANES), lambda i: (i, 0, 0)),
        ),
        compiler_params=pltpu.CompilerParams(
            # Independent per-block partial sums -> megacore-shardable on v7x.
            dimension_semantics=("parallel",),
            # 8192-row f32 tiles need ~16 MiB of input double-buffers; raise
            # v5e's 16 MiB scoped default (no-op on v6e/v7x; far below the
            # physical VMEM on every generation).
            vmem_limit_bytes=32 << 20,
        ),
    )(x2d, y2d)

    # Single cross-lane reduce + mean + sqrt over the tiny partials array.
    sq_sum = jnp.sum(partials)
    if tail != 0:
        xt = lax.slice(x, (bulk,), (n_true,)).astype(jnp.float32)
        yt = lax.slice(y, (bulk,), (n_true,)).astype(jnp.float32)
        dt = xt - yt
        sq_sum = sq_sum + jnp.sum(dt * dt)

    return jnp.sqrt(sq_sum / jnp.float32(n_true))


def rmse_ref(inputs, targets):
    d = inputs.astype(jnp.float32) - targets.astype(jnp.float32)
    return jnp.sqrt(jnp.mean(d * d))


if __name__ == "__main__":
    key = jax.random.PRNGKey(0)
    k1, k2, k3, k4, k5, k6 = jax.random.split(key, 6)

    # Case 1: module-consistent small NCHW shape, forced through the Pallas
    # path (min_pallas_elems=0) so the kernel actually runs on device.
    shape = (2, 4, 16, 16)                       # 2048 elems -> 16 rows, 2 blocks
    a = jax.random.normal(k1, shape, dtype=jnp.float32)
    b = jax.random.normal(k2, shape, dtype=jnp.float32)
    out = jax.block_until_ready(rmse_pallas(a, b, min_pallas_elems=0))
    ref = jax.block_until_ready(rmse_ref(a, b))
    assert jnp.allclose(out, ref, rtol=1e-5, atol=1e-6), (out, ref)

    # Case 2: element count not a multiple of 1024 -> bulk kernel + jnp tail.
    shape2 = (3, 5, 7, 11)                       # 1155 elems: bulk=1024, tail=131
    a2 = jax.random.normal(k3, shape2, dtype=jnp.float32)
    b2 = jax.random.normal(k4, shape2, dtype=jnp.float32)
    out2 = jax.block_until_ready(rmse_pallas(a2, b2, min_pallas_elems=0))
    ref2 = jax.block_until_ready(rmse_ref(a2, b2))
    assert jnp.allclose(out2, ref2, rtol=1e-5, atol=1e-6), (out2, ref2)

    # Case 3: ragged last grid block (mask path), exercised at tiny size by
    # capping the tile rows.
    shape3 = (24, 128)                           # 24 rows, tile=16 -> ragged block
    a3 = jax.random.normal(k5, shape3, dtype=jnp.float32)
    b3 = jax.random.normal(k6, shape3, dtype=jnp.float32)
    out3 = jax.block_until_ready(
        rmse_pallas(a3, b3, min_pallas_elems=0, max_tile_rows=16))
    ref3 = jax.block_until_ready(rmse_ref(a3, b3))
    assert jnp.allclose(out3, ref3, rtol=1e-5, atol=1e-6), (out3, ref3)

    # Case 4: default call path (small-input fallback) keeps module semantics.
    out4 = jax.block_until_ready(rmse_pallas(a, b))
    assert jnp.allclose(out4, ref, rtol=1e-5, atol=1e-6), (out4, ref)

    print("KERNEL_OK")
</pallas_src>

<mosaic_0001>
module attributes {stable_mosaic.version = 11 : i64} {
  func.func @kernel(%arg0: i32, %arg1: memref<8x128xf32, #tpu.memory_space<vmem>>, %arg2: memref<8x128xf32, #tpu.memory_space<vmem>>, %arg3: memref<1x1x128xf32, #tpu.memory_space<vmem>>) attributes {dimension_semantics = [#tpu.dimension_semantics<parallel>], iteration_bounds = array<i64: 2>, scalar_prefetch = 0 : i64, scratch_operands = 0 : i64, tpu.core_type = #tpu.core_type<tc>, window_params = [{transform_indices = @transform_0, window_bounds = array<i64: 8, 128>}, {transform_indices = @transform_1, window_bounds = array<i64: 8, 128>}, {transform_indices = @transform_2, window_bounds = array<i64: 1, 1, 128>}]} {
    %c0 = arith.constant 0 : index
    %c0_0 = arith.constant 0 : index
    %0 = vector.load %arg1[%c0, %c0_0] : memref<8x128xf32, #tpu.memory_space<vmem>>, vector<8x128xf32>
    %c0_1 = arith.constant 0 : index
    %c0_2 = arith.constant 0 : index
    %1 = vector.load %arg2[%c0_1, %c0_2] : memref<8x128xf32, #tpu.memory_space<vmem>>, vector<8x128xf32>
    %2 = arith.subf %0, %1 : vector<8x128xf32>
    %3 = arith.mulf %2, %2 : vector<8x128xf32>
    %cst = arith.constant dense<0.000000e+00> : vector<128xf32>
    %4 = vector.multi_reduction <add>, %3, %cst [0] : vector<8x128xf32> to vector<128xf32>
    %5 = vector.shape_cast %4 : vector<128xf32> to vector<1x128xf32>
    %6 = vector.shape_cast %5 : vector<1x128xf32> to vector<1x1x128xf32>
    %c0_3 = arith.constant 0 : index
    %c0_4 = arith.constant 0 : index
    %c0_5 = arith.constant 0 : index
    %7 = vector.load %arg3[%c0_3, %c0_4, %c0_5] : memref<1x1x128xf32, #tpu.memory_space<vmem>>, vector<1x1x128xf32>
    tpu.vector_store %arg3[%c0_3, %c0_4, %c0_5], %6 {strides = array<i32>} : memref<1x1x128xf32, #tpu.memory_space<vmem>>, vector<1x1x128xf32>,
    return
  }
  func.func @transform_0(%arg0: i32) -> (i32, i32) {
    %c0_i32 = arith.constant 0 : i32
    %c0_i32_0 = arith.constant 0 : i32
    return %arg0, %c0_i32 : i32, i32
  }
  func.func @transform_1(%arg0: i32) -> (i32, i32) {
    %c0_i32 = arith.constant 0 : i32
    %c0_i32_0 = arith.constant 0 : i32
    return %arg0, %c0_i32 : i32, i32
  }
  func.func @transform_2(%arg0: i32) -> (i32, i32, i32) {
    %c0_i32 = arith.constant 0 : i32
    %c0_i32_0 = arith.constant 0 : i32
    %c0_i32_1 = arith.constant 0 : i32
    return %arg0, %c0_i32, %c0_i32_0 : i32, i32, i32
  }
}

</mosaic_0001>

<bundles_post_ra>
// kernel: tpu_custom_call.1
= control target key start
LH: loop header
LB: loop body
LE: loop exit
PB: predicated region body
PF: predicated region fallthrough
CT: control target
= control target key end

     0   :  { %7 = vsyncpa [#allocation3], 0  ;;  %s711_s0 = inlined_call_operand.hbm [shape: f32[16,128], index: 0, kind: input, shape index: {}]   ;;  %s712_s1 = inlined_call_operand.hbm [shape: f32[16,128], index: 1, kind: input, shape index: {}]   ;;  %s713_s2 = inlined_call_operand.hbm [shape: f32[2,1,128], index: 2, kind: output, shape index: {}]  }
   0x1   :  { %9 = vsyncpa [#allocation3 + $0x1], 0 }
   0x2   :  { %10 = vsyncpa [#allocation6], 0 }
   0x3   :  { %12 = vsyncpa [#allocation6 + $0x1], 0 }
   0x4   :  { %13 = vsyncpa [#allocation4], 0 }
   0x5   :  { %15 = vsyncpa [#allocation4 + $0x1], 0  ;;  %s516_s9 = smov 0   ;;  %s518_s10 = smov 0  }
   0x6   :  { %s520_s11 = smov 0   ;;  %s522_s12 = smov 0  }
   0x7 LB: > { %s537_s13 = sadd.s32 4294967295, %s496_s12   ;;  %s308_s14 = sadd.s32 4294967294, %s496_s12   ;;  %s496_s12 = sphi %s522_s12, %s732_s12   ;;  %s492_s11 = sphi %s520_s11, %s731_s11   ;;  %s488_s10 = sphi %s518_s10, %s730_s10   ;;  %s484_s9 = sphi %s516_s9, %s729_s9  }
   0x8   : > { %s541_s15 = sadd.s32 1, %s496_s12   ;;  %s28_s16 = sadd.s32 1, %s492_s11 }
   0x9   : > { %s25_s17 = ssub.s32 %s496_s12, %s541_s15  ;;  %p35_p0 = scmp.ne.s32.totalorder %s492_s11, %s488_s10 }
   0xa   : > { %p26_p1 = scmp.eq.s32.totalorder %s25_s17, 0  ;;  %p36_p2 = scmp.eq.s32.totalorder %s496_s12, 0 }
   0xb   : > { %p41_p3 = scmp.ne.s32.totalorder %s488_s10, %s484_s9  ;;  %p42_p4 = scmp.eq.s32.totalorder %s537_s13, 0 }
   0xc   : > { %s553_s18 = scalar_select %p26_p1, %s492_s11, %s28_s16  }
   0xd   : > { %p555_p5 = por %p36_p2, %p35_p0  ;;  %p559_p6 = por %p42_p4, %p41_p3 }
   0xe   : > { %p91_p7 = scmp.eq.s32.totalorder %s537_s13, 1  ;;  %p97_p8 = scmp.eq.s32.totalorder %s308_s14, 1 }
   0xf   : > { %s717_s20 = scalar_select %p559_p6, 1, 0 }
  0x10   : > { %p338_p10 = scmp.lt.s32.totalorder %s496_s12, 2  ;;  %p566_p11 = por %p91_p7, %p35_p0 }
  0x11   : > { %p570_p12 = por %p97_p8, %p41_p3  ;;  %s575_s23 = sand.u32 1, %s492_s11  }
  0x12   : > { %s718_s21 = scalar_select %p566_p11, 1, 0 }
  0x13   : > { %s719_s22 = scalar_select %p570_p12, 1, 0 }
  0x14   : > { %s312_s24 = sshll.u32 %s496_s12, 7  ;;  %s311_s25 = sshll.u32 %s575_s23, 3 }
  0x15   : > { %s584_s28 = scalar_lea.hbm %s711_s0, %s312_s24  ;;  %s121_s29 = scalar_lea.vmem [#allocation2], %s311_s25 }
  0x16   : > { %s128_s30 = sshll.u32 %s121_s29, 4  ;;  %p590_p13 = pnand %p338_p10, %p555_p5  ;;  %s594_s30 = int_to_ptr.vmem [resolvable:$true] %s128_s30 }
  0x17   : > { %s118_s4 = scalar_lea.sflag [#allocation3], %s575_s23  ;;  %s372_s5 = scalar_lea.hbm %s584_s28, 128 }
  0x18   : > { %p373_p2 = scmp.ne.s32.totalorder %s584_s28, %s372_s5  ;;  %p374_p3 = pneg %p590_p13 }
  0x19   : > { %s377_s8 = scalar_lea.hbm %s711_s0, 256  ;;  %p378_p5 = scmp.lt.s32.totalorder %s584_s28, %s711_s0 }
  0x1a   : > { %p375_p4 = pnand %p374_p3, %p373_p2  ;;  %p379_p8 = scmp.lt.s32.totalorder %s377_s8, %s372_s5 }
  0x1c   : > { %p376_p7 = pneg %p375_p4  ;;  %p380_p10 = por %p379_p8, %p378_p5 }
  0x1e   : > { %p381_p9 = pnand %p380_p10, %p376_p7 }
  0x20   : > { %384 = shalt.err (!%p381_p9)
}
  0x21   : > { %s385_s17 = scalar_lea.vmem %s594_s30, 128  ;;  %s498_s19 = smov [#allocation2]  }
  0x22   : > { %p386_p0 = scmp.ne.s32.totalorder %s594_s30, %s385_s17  ;;  %s390_s26 = sshll.u32 %s498_s19, 4  ;;  %s391_s26 = int_to_ptr.vmem [resolvable:$false] %s390_s26 }
  0x23   : > { %s392_s27 = scalar_lea.vmem %s391_s26, 256  ;;  %p393_p1 = scmp.lt.s32.totalorder %s594_s30, %s391_s26 }
  0x24   : > { %p388_p2 = pnand %p386_p0, %p374_p3  ;;  %p394_p12 = scmp.lt.s32.totalorder %s392_s27, %s385_s17 }
  0x26   : > { %p389_p4 = pneg %p388_p2  ;;  %p395_p11 = por %p394_p12, %p393_p1 }
  0x28   : > { %p396_p5 = pnand %p395_p11, %p389_p4 }
  0x2a   : > { %399 = shalt.err (!%p396_p5)
}
  0x2b   : > { %330 = dma.hbm_to_vmem [thread:$0]  (!%p590_p13), %s584_s28, 128, %s594_s30, %s118_s4  }
  0x2c   : > { %p721_p9 = scmp.lt.s32.totalorder %s496_s12, 3  ;;  %p722_p0 = scmp.ge.s32.totalorder %s496_s12, 1 }
  0x2d   : > { %s636_s7 = scalar_lea.hbm %s712_s1, %s312_s24  ;;  %s139_s8 = scalar_lea.vmem [#allocation5], %s311_s25 }
  0x2e   : > { %p627_p7 = pnand %p722_p0, %p721_p9  ;;  %s146_s14 = sshll.u32 %s139_s8, 4  ;;  %s147_s14 = int_to_ptr.vmem [resolvable:$true] %s146_s14 }
  0x2f   : > { %s136_s28 = scalar_lea.sflag [#allocation6], %s575_s23  ;;  %s400_s30 = scalar_lea.hbm %s636_s7, 128 }
  0x30   : > { %s723_s29 = scalar_select %p627_p7, 1, 0 }
  0x31   : > { %p401_p11 = scmp.ne.s32.totalorder %s636_s7, %s400_s30  ;;  %s405_s17 = scalar_lea.hbm %s712_s1, 256 }
  0x32   : > { %p406_p8 = scmp.lt.s32.totalorder %s636_s7, %s712_s1  ;;  %p407_p10 = scmp.lt.s32.totalorder %s405_s17, %s400_s30 }
  0x33   : > { %p403_p12 = pnand %p401_p11, %p374_p3 }
  0x34   : > { %p408_p2 = por %p407_p10, %p406_p8 }
  0x35   : > { %p404_p1 = pneg %p403_p12 }
  0x37   : > { %p409_p4 = pnand %p408_p2, %p404_p1 }
  0x39   : > { %412 = shalt.err (!%p409_p4)
}
  0x3a   : > { %s413_s25 = scalar_lea.vmem %s147_s14, 128  ;;  %s499_s23 = smov [#allocation5]  }
  0x3b   : > { %p414_p5 = scmp.ne.s32.totalorder %s147_s14, %s413_s25  ;;  %s418_s26 = sshll.u32 %s499_s23, 4  ;;  %s419_s26 = int_to_ptr.vmem [resolvable:$false] %s418_s26 }
  0x3c   : > { %s420_s27 = scalar_lea.vmem %s419_s26, 256  ;;  %p421_p11 = scmp.lt.s32.totalorder %s147_s14, %s419_s26 }
  0x3d   : > { %p416_p9 = pnand %p414_p5, %p374_p3  ;;  %p422_p12 = scmp.lt.s32.totalorder %s420_s27, %s413_s25 }
  0x3f   : > { %p417_p0 = pneg %p416_p9  ;;  %p423_p6 = por %p422_p12, %p421_p11 }
  0x41   : > { %p424_p7 = pnand %p423_p6, %p417_p0 }
  0x43   : > { %427 = shalt.err (!%p424_p7)
}
  0x44   : > { %333 = dma.hbm_to_vmem [thread:$0]  (!%p590_p13), %s636_s7, 128, %s147_s14, %s136_s28  }
  0x45   : > { %p724_p1 = scmp.ne.s32.totalorder %s723_s29, 0 }
  0x46   : > { %s662_s5 = sand.u32 (!%p724_p1), 1, %s488_s10   ;;  %p725_p3 = scmp.ne.s32.totalorder (!%p724_p1), %s717_s20, 0 }
  0x47   : > { %155 = sbr.rel (%p724_p1) target bundleno = 109 (0x6d), region = 28  ;;  %s316_s6 = sshll.u32 (!%p724_p1), %s662_s5, 3 }
  0x48   : > { %s158_s8 = scalar_lea.sflag (!%p724_p1), [#allocation3], %s662_s5  ;;  %s161_s30 = scalar_lea.vmem (!%p724_p1), [#allocation2], %s316_s6 }
  0x4c   : > { %471 = dma.done.wait (%p725_p3), %s158_s8, 128  }
  0x4d   : > { %473 = vsyncadd (%p725_p3), %s158_s8, 4294967168  ;;  %s167_s3 = scalar_lea.sflag [#allocation6], %s662_s5  ;;  %s170_s7 = scalar_lea.vmem [#allocation5], %s316_s6 }
  0x4e   : > { %475 = dma.done.wait (%p725_p3), %s167_s3, 128  }
  0x4f   : > { %477 = vsyncadd (%p725_p3), %s167_s3, 4294967168  ;;  %v195_v0 = vld [vmem:[%s161_s30] sm:$0xff]  ;;  %v196_v1 = vld [vmem:[%s170_s7] sm:$0xff]  ;;  %s194_s29 = scalar_lea.vmem [#allocation7], %s662_s5  ;;  %s318_s28 = sshll.u32 %s537_s13, 4 }
  0x50   : > { %v197_v2 = vsub.f32 %v195_v0, %v196_v1  ;;  %s219_s14 = sshll.u32 %s194_s29, 4  ;;  %s217_s16 = scalar_lea.hbm %s713_s2, %s318_s28  ;;  %s220_s14 = int_to_ptr.vmem [resolvable:$true] %s219_s14 }
  0x51   : > { %s207_s17 = scalar_lea.sflag [#allocation4], %s662_s5  ;;  %s428_s24 = scalar_lea.vmem %s220_s14, 16 }
  0x52   : > { %v198_v3 = vmul.f32 %v197_v2, %v197_v2  ;;  %p429_p6 = scmp.ne.s32.totalorder %s220_s14, %s428_s24  ;;  %p726_p13 = scmp.ne.s32.totalorder %s718_s21, 0 }
  0x53   : > { %s500_s19 = smov [#allocation7]  }
  0x54   : > { %v199_v4 = vrot.slane %v198_v3, 4  ;;  %p430_p7 = pnand %p429_p6, %p726_p13  ;;  %s432_s25 = sshll.u32 %s500_s19, 4  ;;  %s433_s25 = int_to_ptr.vmem [resolvable:$false] %s432_s25 }
  0x55   : > { %s434_s23 = scalar_lea.vmem %s433_s25, 32  ;;  %p435_p10 = scmp.lt.s32.totalorder %s220_s14, %s433_s25 }
  0x56   : > { %v200_v5 = vadd.f32 %v199_v4, %v198_v3  ;;  %p431_p8 = pneg %p430_p7  ;;  %p436_p2 = scmp.lt.s32.totalorder %s434_s23, %s428_s24 }
  0x58   : > { %v201_v6 = vrot.slane %v200_v5, 2  ;;  %p437_p4 = por %p436_p2, %p435_p10 }
  0x5a   : > { %v202_v7 = vadd.f32 %v201_v6, %v200_v5  ;;  %p438_p5 = pnand %p437_p4, %p431_p8 }
  0x5c   : > { %v203_v8 = vrot.slane %v202_v7, 1 }
  0x5e   : > { %v204_v9 = vadd.f32 %v203_v8, %v202_v7 }
  0x60   : > { %205 = vst [vmem:[%s194_s29] sm:$0x1] %v204_v9 }
  0x61   : > { %441 = shalt.err (!%p438_p5)
}
  0x62   : > { %s442_s13 = scalar_lea.hbm %s217_s16, 16  ;;  %s446_s5 = scalar_lea.hbm %s713_s2, 32 }
  0x63   : > { %p443_p9 = scmp.ne.s32.totalorder %s217_s16, %s442_s13  ;;  %p447_p12 = scmp.lt.s32.totalorder %s217_s16, %s713_s2 }
  0x64   : > { %p448_p1 = scmp.lt.s32.totalorder %s446_s5, %s442_s13 }
  0x65   : > { %p444_p0 = pnand %p443_p9, %p726_p13 }
  0x66   : > { %p449_p3 = por %p448_p1, %p447_p12 }
  0x67   : > { %p445_p11 = pneg %p444_p0 }
  0x69   : > { %p450_p6 = pnand %p449_p3, %p445_p11 }
  0x6b   : > { %453 = shalt.err (!%p450_p6)
}
  0x6c   : > { %325 = dma.vmem_to_hbm [thread:$0]  (%p726_p13), %s220_s14, 16, %s217_s16, %s207_s17  }
  0x6d PF: > { %s231_s30 = sand.u32 1, %s484_s9   ;;  %p727_p7 = scmp.ne.s32.totalorder %s719_s22, 0 }
  0x6e   : > { %p728_p8 = scmp.ge.s32.totalorder %s496_s12, 2  ;;  %s232_s3 = scalar_lea.sflag [#allocation4], %s231_s30 }
  0x70   : > { %p335_p10 = pnand %p728_p8, %p727_p7 }
  0x72   : > { %p336_p2 = pneg %p335_p10 }
  0x74   : > { %479 = dma.done.wait (%p336_p2), %s232_s3, 16  }
  0x75   : > { %481 = vsyncadd (%p336_p2), %s232_s3, 4294967280  ;;  %p18_p4 = scmp.ge.s32.totalorder %s541_s15, 4   ;;  %s729_s9 = smov %s488_s10 }
  0x76   : > { %s730_s10 = smov %s492_s11  ;;  %s731_s11 = smov %s553_s18 }
  0x77   : > { %s732_s12 = smov %s541_s15  ;;  %20 = sbr.rel (!%p18_p4) target bundleno = 7 (0x7), region = 86 }
  0x7c   :  { %236 = vsyncpa [#allocation3], 1 }
  0x7d   :  { %238 = vsyncpa [#allocation3 + $0x1], 1 }
  0x7e   :  { %239 = vsyncpa [#allocation6], 1 }
  0x7f   :  { %241 = vsyncpa [#allocation6 + $0x1], 1 }
  0x80   :  { %242 = vsyncpa [#allocation4], 1 }
  0x81   :  { %244 = vsyncpa [#allocation4 + $0x1], 1 }

</bundles_post_ra>
